<compile_context>
chip_gen: v6e
topology: v6e:2x2x1
jax: 0.10.0
libtpu: 0.0.40
codegen_flags: <defaults>
</compile_context>

<pallas_src>
import jax
import jax.numpy as jnp
from jax.experimental import pallas as pl
from jax.experimental.pallas import tpu as pltpu

EPS_WS = 1e-5   # StdConv2d eps
EPS_BN = 1e-5   # BatchNorm2d eps

# bf16 operands feed the MXU at full rate on v5e/v6e/v7x and halve weight DMA;
# accumulation is f32 (preferred_element_type), epilogue math is f32.
MATMUL_DTYPE = jnp.bfloat16


# ---------------------------------------------------------------------------
# Wrapper-side weight preprocessing (input independent -> hoisted out of kernel)
# ---------------------------------------------------------------------------
def _std_weights_hwio(w_oihw):
    # torch (Cout, Cin, 3, 3) -> standardized HWIO (3, 3, Cin, Cout);
    # biased variance over (Cin, kh, kw) per output channel, eps = 1e-5.
    w = jnp.transpose(w_oihw, (2, 3, 1, 0)).astype(jnp.float32)
    m = jnp.mean(w, axis=(0, 1, 2), keepdims=True)
    v = jnp.mean((w - m) ** 2, axis=(0, 1, 2), keepdims=True)
    return (w - m) / jnp.sqrt(v + EPS_WS)


def _banded_weights(w_hwio, w_dim):
    # Fold the kw taps and the W-boundary zero padding of a stride-1 3x3 conv
    # into a block-tridiagonal matrix:
    #   B[kh*(W*Cin) + w_in*Cin + ci, w_out*Cout + co]
    #       = w_hwio[kh, w_in - w_out + 1, ci, co]   (0 if |w_in - w_out| > 1)
    _, _, cin, cout = w_hwio.shape
    w_in = jnp.arange(w_dim)[:, None]
    w_out = jnp.arange(w_dim)[None, :]
    kw = w_in - w_out + 1                                   # (W, W)
    valid = (kw >= 0) & (kw <= 2)
    g = w_hwio[:, jnp.clip(kw, 0, 2), :, :]                 # (3, W, W, Cin, Cout)
    g = jnp.where(valid[None, :, :, None, None], g, 0.0)
    g = jnp.transpose(g, (0, 1, 3, 2, 4))                   # (3, W, Cin, W, Cout)
    return g.reshape(3 * w_dim * cin, w_dim * cout)


# ---------------------------------------------------------------------------
# Pallas kernel
# ---------------------------------------------------------------------------
def _make_kernel(n, h, w, cout):
    nh = n * h
    wc = w * cout

    def kernel(x_ref, w1_ref, w2_ref, g1_ref, b1_ref, g2_ref, b2_ref, out_ref):
        # Row-boundary masks for the kh = 0 / kh = 2 taps: zero the first /
        # last H row of each image (also stops cross-image bleed from roll).
        row_in_img = jax.lax.broadcasted_iota(jnp.int32, (nh, wc), 0) % h
        not_first = row_in_img != 0
        not_last = row_in_img != (h - 1)

        # Channel-averaging matrix (pure structure, built in-kernel, no DMA):
        #   avg[i, j] = 1/W if (i % C) == (j % C) else 0
        ci = jax.lax.broadcasted_iota(jnp.int32, (wc, wc), 0) % cout
        cj = jax.lax.broadcasted_iota(jnp.int32, (wc, wc), 1) % cout
        avg = jnp.where(ci == cj, jnp.float32(1.0 / w), jnp.float32(0.0))

        def bn_stats(y):
            # Training-mode BatchNorm batch stats over all N*H*W pixels per
            # channel: per-lane first/second moments (cross-sublane mean) then
            # ONE tiny dot with `avg` to average over the W positions of each
            # channel and re-tile across lanes (stays lane-dense).
            s = jnp.concatenate(
                [jnp.mean(y, axis=0, keepdims=True),
                 jnp.mean(y * y, axis=0, keepdims=True)], axis=0)       # (2, W*C)
            st = jnp.dot(s, avg, preferred_element_type=jnp.float32)     # (2, W*C)
            mu = st[0:1, :]
            var = st[1:2, :] - mu * mu
            return mu, jax.lax.rsqrt(var + EPS_BN)

        def conv3x3_banded(a_f32, w_ref):
            # Stride-1 3x3 SAME StdConv2d as 3 accumulating K = W*C MXU dots.
            # kw taps + W-boundary padding live in the banded weight blocks;
            # kh = 0 / 2 taps are sublane rolls (XLU) + boundary-row masks —
            # no lane concat, no (N*H, 3*W*C) operand materialization.
            tap_m1 = jnp.where(not_first, pltpu.roll(a_f32, 1, axis=0), 0.0)
            tap_p1 = jnp.where(not_last, pltpu.roll(a_f32, nh - 1, axis=0), 0.0)
            acc = jnp.dot(tap_m1.astype(MATMUL_DTYPE), w_ref[0:wc, :],
                          preferred_element_type=jnp.float32)            # kh = 0
            acc += jnp.dot(a_f32.astype(MATMUL_DTYPE), w_ref[wc:2 * wc, :],
                           preferred_element_type=jnp.float32)           # kh = 1
            acc += jnp.dot(tap_p1.astype(MATMUL_DTYPE), w_ref[2 * wc:3 * wc, :],
                           preferred_element_type=jnp.float32)           # kh = 2
            return acc

        x = x_ref[...]                                                   # (N*H, W*C) f32

        # ---- conv1 -> bn1 -> relu (all lane-dense, f32 epilogue)
        y1 = conv3x3_banded(x, w1_ref)
        mu1, inv1 = bn_stats(y1)
        h1 = jnp.maximum((y1 - mu1) * (inv1 * g1_ref[...]) + b1_ref[...], 0.0)

        # ---- conv2 -> bn2 -> residual add -> relu
        y2 = conv3x3_banded(h1, w2_ref)
        mu2, inv2 = bn_stats(y2)
        h2 = (y2 - mu2) * (inv2 * g2_ref[...]) + b2_ref[...]
        out_ref[...] = jnp.maximum(h2 + x, 0.0)

    return kernel


# ---------------------------------------------------------------------------
# Wrapper (layout plumbing lives here, not in the kernel)
# ---------------------------------------------------------------------------
def basic_block(x_nchw, w1, w2, g1, b1, g2, b2):
    """x_nchw: (N, C, H, W) like PyTorch; w*: (Cout, Cin, 3, 3) PyTorch layout."""
    n, cin, h, w = x_nchw.shape
    cout = w1.shape[0]
    assert w1.shape[1] == cin and w2.shape == (cout, cout, 3, 3)
    # residual add with downsample=None requires inplanes == planes
    assert cin == cout, "BasicBlock residual needs inplanes == planes"
    wc = w * cout

    # Single lane-folded f32 activation input: serves as conv1 operand AND
    # residual (1x HBM->VMEM traffic; taps are built in-kernel).
    x = jnp.transpose(x_nchw, (0, 2, 3, 1)).astype(jnp.float32)          # NHWC
    x_lane = x.reshape(n * h, w * cin)

    # Standardize + band the weights once (input independent), ship as bf16.
    w1b = _banded_weights(_std_weights_hwio(w1), w).astype(MATMUL_DTYPE)
    w2b = _banded_weights(_std_weights_hwio(w2), w).astype(MATMUL_DTYPE)

    # Per-channel BN affine params tiled across the lane-folded (W, C) axis.
    def lane_tile(p):
        return jnp.tile(p.astype(jnp.float32).reshape(-1), (w,)).reshape(1, wc)

    out2d = pl.pallas_call(
        _make_kernel(n, h, w, cout),
        out_shape=jax.ShapeDtypeStruct((n * h, wc), jnp.float32),
        in_specs=[pl.BlockSpec(memory_space=pltpu.MemorySpace.VMEM)] * 7,
        out_specs=pl.BlockSpec(memory_space=pltpu.MemorySpace.VMEM),
        compiler_params=pltpu.CompilerParams(vmem_limit_bytes=32 * 1024 * 1024),
    )(x_lane, w1b, w2b, lane_tile(g1), lane_tile(b1), lane_tile(g2), lane_tile(b2))

    out = out2d.reshape(n, h, w, cout)
    return jnp.transpose(out, (0, 3, 1, 2))                              # NCHW


# ---------------------------------------------------------------------------
# Pure-JAX reference (for correctness check)
# ---------------------------------------------------------------------------
def basic_block_ref(x_nchw, w1, w2, g1, b1, g2, b2):
    x = jnp.transpose(x_nchw, (0, 2, 3, 1)).astype(jnp.float32)

    def std_conv(inp, wt):
        w_hwio = jnp.transpose(wt, (2, 3, 1, 0))                         # (3,3,Cin,Cout)
        m = jnp.mean(w_hwio, axis=(0, 1, 2), keepdims=True)
        v = jnp.mean((w_hwio - m) ** 2, axis=(0, 1, 2), keepdims=True)
        ws = (w_hwio - m) / jnp.sqrt(v + EPS_WS)
        return jax.lax.conv_general_dilated(
            inp, ws, window_strides=(1, 1), padding="SAME",
            dimension_numbers=("NHWC", "HWIO", "NHWC"))

    def bn(inp, g, b):
        mu = jnp.mean(inp, axis=(0, 1, 2), keepdims=True)
        var = jnp.mean((inp - mu) ** 2, axis=(0, 1, 2), keepdims=True)
        return (inp - mu) / jnp.sqrt(var + EPS_BN) * g + b

    h1 = jax.nn.relu(bn(std_conv(x, w1), g1, b1))
    h2 = bn(std_conv(h1, w2), g2, b2)
    out = jax.nn.relu(h2 + x)
    return jnp.transpose(out, (0, 3, 1, 2))


if __name__ == "__main__":
    # inplanes = planes = 8, stride = 1, downsample = None; W * C = 128 lanes.
    N, C, H, W = 2, 8, 16, 16
    key = jax.random.PRNGKey(0)
    kx, k1, k2 = jax.random.split(key, 3)

    x = jax.random.normal(kx, (N, C, H, W), jnp.float32)
    w1 = jax.random.normal(k1, (C, C, 3, 3), jnp.float32) * 0.1          # conv1 weight
    w2 = jax.random.normal(k2, (C, C, 3, 3), jnp.float32) * 0.1          # conv2 weight
    g1 = jnp.ones((C,), jnp.float32)     # BatchNorm2d default affine init
    b1 = jnp.zeros((C,), jnp.float32)
    g2 = jnp.ones((C,), jnp.float32)
    b2 = jnp.zeros((C,), jnp.float32)

    out = basic_block(x, w1, w2, g1, b1, g2, b2)
    jax.block_until_ready(out)

    ref = basic_block_ref(x, w1, w2, g1, b1, g2, b2)
    err = float(jnp.max(jnp.abs(out - ref)))
    assert out.shape == (N, C, H, W), out.shape
    # Tolerance loosened vs. the pure-f32 version because the MXU operands are
    # bf16 (expected max |err| ~1e-2 here); structural bugs would be O(1).
    assert jnp.allclose(out, ref, atol=5e-2, rtol=5e-2), f"max abs err = {err}"

    print("KERNEL_OK")
</pallas_src>

<mosaic_0001>
module attributes {stable_mosaic.version = 11 : i64} {
  func.func @kernel(%arg0: memref<32x128xf32, #tpu.memory_space<vmem>>, %arg1: memref<384x128xbf16, #tpu.memory_space<vmem>>, %arg2: memref<384x128xbf16, #tpu.memory_space<vmem>>, %arg3: memref<1x128xf32, #tpu.memory_space<vmem>>, %arg4: memref<1x128xf32, #tpu.memory_space<vmem>>, %arg5: memref<1x128xf32, #tpu.memory_space<vmem>>, %arg6: memref<1x128xf32, #tpu.memory_space<vmem>>, %arg7: memref<32x128xf32, #tpu.memory_space<vmem>>) attributes {dimension_semantics = [], scalar_prefetch = 0 : i64, scratch_operands = 0 : i64, tpu.core_type = #tpu.core_type<tc>} {
    %0 = tpu.iota {dimensions = array<i32: 0>} : vector<32x128xi32>
    %c16_i32 = arith.constant 16 : i32
    %c0_i32 = arith.constant 0 : i32
    %1 = arith.cmpi eq, %c16_i32, %c0_i32 : i32
    %c1_i32 = arith.constant 1 : i32
    %2 = arith.select %1, %c1_i32, %c16_i32 : i32
    %3 = vector.broadcast %2 : i32 to vector<32x128xi32>
    %4 = arith.remsi %0, %3 : vector<32x128xi32>
    %c0_i32_0 = arith.constant 0 : i32
    %5 = vector.broadcast %c0_i32_0 : i32 to vector<32x128xi32>
    %6 = arith.cmpi ne, %4, %5 : vector<32x128xi32>
    %c0_i32_1 = arith.constant 0 : i32
    %7 = vector.broadcast %c0_i32_1 : i32 to vector<32x128xi32>
    %8 = arith.cmpi slt, %4, %7 : vector<32x128xi32>
    %c0_i32_2 = arith.constant 0 : i32
    %9 = arith.cmpi slt, %2, %c0_i32_2 : i32
    %10 = vector.broadcast %9 : i1 to vector<32x128xi1>
    %11 = vector.broadcast %10 : vector<32x128xi1> to vector<32x128xi1>
    %12 = arith.xori %8, %11 : vector<32x128xi1>
    %13 = arith.andi %12, %6 : vector<32x128xi1>
    %14 = vector.broadcast %2 : i32 to vector<32x128xi32>
    %15 = arith.addi %4, %14 : vector<32x128xi32>
    %16 = arith.select %13, %15, %4 : vector<32x128xi1>, vector<32x128xi32>
    %c0_i32_3 = arith.constant 0 : i32
    %17 = vector.broadcast %c0_i32_3 : i32 to vector<32x128xi32>
    %18 = arith.cmpi ne, %16, %17 : vector<32x128xi32>
    %c15_i32 = arith.constant 15 : i32
    %19 = vector.broadcast %c15_i32 : i32 to vector<32x128xi32>
    %20 = arith.cmpi ne, %16, %19 : vector<32x128xi32>
    %21 = tpu.iota {dimensions = array<i32: 0>} : vector<128x128xi32>
    %c8_i32 = arith.constant 8 : i32
    %c0_i32_4 = arith.constant 0 : i32
    %22 = arith.cmpi eq, %c8_i32, %c0_i32_4 : i32
    %c1_i32_5 = arith.constant 1 : i32
    %23 = arith.select %22, %c1_i32_5, %c8_i32 : i32
    %24 = vector.broadcast %23 : i32 to vector<128x128xi32>
    %25 = arith.remsi %21, %24 : vector<128x128xi32>
    %c0_i32_6 = arith.constant 0 : i32
    %26 = vector.broadcast %c0_i32_6 : i32 to vector<128x128xi32>
    %27 = arith.cmpi ne, %25, %26 : vector<128x128xi32>
    %c0_i32_7 = arith.constant 0 : i32
    %28 = vector.broadcast %c0_i32_7 : i32 to vector<128x128xi32>
    %29 = arith.cmpi slt, %25, %28 : vector<128x128xi32>
    %c0_i32_8 = arith.constant 0 : i32
    %30 = arith.cmpi slt, %23, %c0_i32_8 : i32
    %31 = vector.broadcast %30 : i1 to vector<128x128xi1>
    %32 = vector.broadcast %31 : vector<128x128xi1> to vector<128x128xi1>
    %33 = arith.xori %29, %32 : vector<128x128xi1>
    %34 = arith.andi %33, %27 : vector<128x128xi1>
    %35 = vector.broadcast %23 : i32 to vector<128x128xi32>
    %36 = arith.addi %25, %35 : vector<128x128xi32>
    %37 = arith.select %34, %36, %25 : vector<128x128xi1>, vector<128x128xi32>
    %38 = tpu.iota {dimensions = array<i32: 1>} : vector<128x128xi32>
    %c8_i32_9 = arith.constant 8 : i32
    %c0_i32_10 = arith.constant 0 : i32
    %39 = arith.cmpi eq, %c8_i32_9, %c0_i32_10 : i32
    %c1_i32_11 = arith.constant 1 : i32
    %40 = arith.select %39, %c1_i32_11, %c8_i32_9 : i32
    %41 = vector.broadcast %40 : i32 to vector<128x128xi32>
    %42 = arith.remsi %38, %41 : vector<128x128xi32>
    %c0_i32_12 = arith.constant 0 : i32
    %43 = vector.broadcast %c0_i32_12 : i32 to vector<128x128xi32>
    %44 = arith.cmpi ne, %42, %43 : vector<128x128xi32>
    %c0_i32_13 = arith.constant 0 : i32
    %45 = vector.broadcast %c0_i32_13 : i32 to vector<128x128xi32>
    %46 = arith.cmpi slt, %42, %45 : vector<128x128xi32>
    %c0_i32_14 = arith.constant 0 : i32
    %47 = arith.cmpi slt, %40, %c0_i32_14 : i32
    %48 = vector.broadcast %47 : i1 to vector<128x128xi1>
    %49 = vector.broadcast %48 : vector<128x128xi1> to vector<128x128xi1>
    %50 = arith.xori %46, %49 : vector<128x128xi1>
    %51 = arith.andi %50, %44 : vector<128x128xi1>
    %52 = vector.broadcast %40 : i32 to vector<128x128xi32>
    %53 = arith.addi %42, %52 : vector<128x128xi32>
    %54 = arith.select %51, %53, %42 : vector<128x128xi1>, vector<128x128xi32>
    %55 = arith.cmpi eq, %37, %54 : vector<128x128xi32>
    %cst = arith.constant 6.250000e-02 : f32
    %cst_15 = arith.constant 0.000000e+00 : f32
    %56 = vector.broadcast %cst : f32 to vector<128x128xf32>
    %57 = vector.broadcast %cst_15 : f32 to vector<128x128xf32>
    %58 = arith.select %55, %56, %57 : vector<128x128xi1>, vector<128x128xf32>
    %c0 = arith.constant 0 : index
    %c0_16 = arith.constant 0 : index
    %59 = vector.load %arg0[%c0, %c0_16] : memref<32x128xf32, #tpu.memory_space<vmem>>, vector<32x128xf32>
    %c1_i32_17 = arith.constant 1 : i32
    %60 = tpu.dynamic_rotate %59 by %c1_i32_17 dim 0 : vector<32x128xf32>, i32 -> vector<32x128xf32>
    %cst_18 = arith.constant 0.000000e+00 : f32
    %61 = vector.broadcast %cst_18 : f32 to vector<32x128xf32>
    %62 = arith.select %18, %60, %61 : vector<32x128xi1>, vector<32x128xf32>
    %c31_i32 = arith.constant 31 : i32
    %63 = tpu.dynamic_rotate %59 by %c31_i32 dim 0 : vector<32x128xf32>, i32 -> vector<32x128xf32>
    %cst_19 = arith.constant 0.000000e+00 : f32
    %64 = vector.broadcast %cst_19 : f32 to vector<32x128xf32>
    %65 = arith.select %20, %63, %64 : vector<32x128xi1>, vector<32x128xf32>
    %66 = arith.truncf %62 : vector<32x128xf32> to vector<32x128xbf16>
    %c0_20 = arith.constant 0 : index
    %c0_21 = arith.constant 0 : index
    %67 = vector.load %arg1[%c0_20, %c0_21] : memref<384x128xbf16, #tpu.memory_space<vmem>>, vector<128x128xbf16>
    %cst_22 = arith.constant dense<0.000000e+00> : vector<32x128xf32>
    %68 = tpu.matmul %66, %67, %cst_22 {dimension_numbers = #tpu.dot_dimension_numbers<[1], [0], [0], [1], [0, 0, 1, 1], [], []>} : vector<32x128xbf16>, vector<128x128xbf16>, vector<32x128xf32> -> vector<32x128xf32>
    %69 = arith.truncf %59 : vector<32x128xf32> to vector<32x128xbf16>
    %c128 = arith.constant 128 : index
    %c0_23 = arith.constant 0 : index
    %70 = vector.load %arg1[%c128, %c0_23] : memref<384x128xbf16, #tpu.memory_space<vmem>>, vector<128x128xbf16>
    %cst_24 = arith.constant dense<0.000000e+00> : vector<32x128xf32>
    %71 = tpu.matmul %69, %70, %cst_24 {dimension_numbers = #tpu.dot_dimension_numbers<[1], [0], [0], [1], [0, 0, 1, 1], [], []>} : vector<32x128xbf16>, vector<128x128xbf16>, vector<32x128xf32> -> vector<32x128xf32>
    %72 = arith.addf %68, %71 : vector<32x128xf32>
    %73 = arith.truncf %65 : vector<32x128xf32> to vector<32x128xbf16>
    %c256 = arith.constant 256 : index
    %c0_25 = arith.constant 0 : index
    %74 = vector.load %arg1[%c256, %c0_25] : memref<384x128xbf16, #tpu.memory_space<vmem>>, vector<128x128xbf16>
    %cst_26 = arith.constant dense<0.000000e+00> : vector<32x128xf32>
    %75 = tpu.matmul %73, %74, %cst_26 {dimension_numbers = #tpu.dot_dimension_numbers<[1], [0], [0], [1], [0, 0, 1, 1], [], []>} : vector<32x128xbf16>, vector<128x128xbf16>, vector<32x128xf32> -> vector<32x128xf32>
    %76 = arith.addf %72, %75 : vector<32x128xf32>
    %cst_27 = arith.constant dense<0.000000e+00> : vector<128xf32>
    %77 = vector.multi_reduction <add>, %76, %cst_27 [0] : vector<32x128xf32> to vector<128xf32>
    %78 = vector.shape_cast %77 : vector<128xf32> to vector<1x128xf32>
    %cst_28 = arith.constant 3.200000e+01 : f32
    %79 = vector.broadcast %cst_28 : f32 to vector<1x128xf32>
    %80 = arith.divf %78, %79 : vector<1x128xf32>
    %81 = arith.mulf %76, %76 : vector<32x128xf32>
    %cst_29 = arith.constant dense<0.000000e+00> : vector<128xf32>
    %82 = vector.multi_reduction <add>, %81, %cst_29 [0] : vector<32x128xf32> to vector<128xf32>
    %83 = vector.shape_cast %82 : vector<128xf32> to vector<1x128xf32>
    %cst_30 = arith.constant 3.200000e+01 : f32
    %84 = vector.broadcast %cst_30 : f32 to vector<1x128xf32>
    %85 = arith.divf %83, %84 : vector<1x128xf32>
    %86 = tpu.concatenate %80, %85 in 0 : vector<1x128xf32>, vector<1x128xf32> -> vector<2x128xf32>
    %cst_31 = arith.constant dense<0.000000e+00> : vector<2x128xf32>
    %87 = tpu.matmul %86, %58, %cst_31 {dimension_numbers = #tpu.dot_dimension_numbers<[1], [0], [0], [1], [0, 0, 1, 1], [], []>} : vector<2x128xf32>, vector<128x128xf32>, vector<2x128xf32> -> vector<2x128xf32>
    %88 = vector.extract_strided_slice %87 {offsets = [0, 0], sizes = [1, 128], strides = [1, 1]} : vector<2x128xf32> to vector<1x128xf32>
    %89 = vector.extract_strided_slice %87 {offsets = [1, 0], sizes = [1, 128], strides = [1, 1]} : vector<2x128xf32> to vector<1x128xf32>
    %90 = arith.mulf %88, %88 : vector<1x128xf32>
    %91 = arith.subf %89, %90 : vector<1x128xf32>
    %cst_32 = arith.constant 9.99999974E-6 : f32
    %92 = vector.broadcast %cst_32 : f32 to vector<1x128xf32>
    %93 = arith.addf %91, %92 : vector<1x128xf32>
    %94 = math.rsqrt %93 : vector<1x128xf32>
    %95 = vector.broadcast %88 : vector<1x128xf32> to vector<32x128xf32>
    %96 = arith.subf %76, %95 : vector<32x128xf32>
    %c0_33 = arith.constant 0 : index
    %c0_34 = arith.constant 0 : index
    %97 = vector.load %arg3[%c0_33, %c0_34] : memref<1x128xf32, #tpu.memory_space<vmem>>, vector<1x128xf32>
    %98 = arith.mulf %94, %97 : vector<1x128xf32>
    %99 = vector.broadcast %98 : vector<1x128xf32> to vector<32x128xf32>
    %100 = arith.mulf %96, %99 : vector<32x128xf32>
    %c0_35 = arith.constant 0 : index
    %c0_36 = arith.constant 0 : index
    %101 = vector.load %arg4[%c0_35, %c0_36] : memref<1x128xf32, #tpu.memory_space<vmem>>, vector<1x128xf32>
    %102 = vector.broadcast %101 : vector<1x128xf32> to vector<32x128xf32>
    %103 = arith.addf %100, %102 : vector<32x128xf32>
    %cst_37 = arith.constant 0.000000e+00 : f32
    %104 = vector.broadcast %cst_37 : f32 to vector<32x128xf32>
    %105 = arith.maximumf %103, %104 : vector<32x128xf32>
    %c1_i32_38 = arith.constant 1 : i32
    %106 = tpu.dynamic_rotate %105 by %c1_i32_38 dim 0 : vector<32x128xf32>, i32 -> vector<32x128xf32>
    %cst_39 = arith.constant 0.000000e+00 : f32
    %107 = vector.broadcast %cst_39 : f32 to vector<32x128xf32>
    %108 = arith.select %18, %106, %107 : vector<32x128xi1>, vector<32x128xf32>
    %c31_i32_40 = arith.constant 31 : i32
    %109 = tpu.dynamic_rotate %105 by %c31_i32_40 dim 0 : vector<32x128xf32>, i32 -> vector<32x128xf32>
    %cst_41 = arith.constant 0.000000e+00 : f32
    %110 = vector.broadcast %cst_41 : f32 to vector<32x128xf32>
    %111 = arith.select %20, %109, %110 : vector<32x128xi1>, vector<32x128xf32>
    %112 = arith.truncf %108 : vector<32x128xf32> to vector<32x128xbf16>
    %c0_42 = arith.constant 0 : index
    %c0_43 = arith.constant 0 : index
    %113 = vector.load %arg2[%c0_42, %c0_43] : memref<384x128xbf16, #tpu.memory_space<vmem>>, vector<128x128xbf16>
    %cst_44 = arith.constant dense<0.000000e+00> : vector<32x128xf32>
    %114 = tpu.matmul %112, %113, %cst_44 {dimension_numbers = #tpu.dot_dimension_numbers<[1], [0], [0], [1], [0, 0, 1, 1], [], []>} : vector<32x128xbf16>, vector<128x128xbf16>, vector<32x128xf32> -> vector<32x128xf32>
    %115 = arith.truncf %105 : vector<32x128xf32> to vector<32x128xbf16>
    %c128_45 = arith.constant 128 : index
    %c0_46 = arith.constant 0 : index
    %116 = vector.load %arg2[%c128_45, %c0_46] : memref<384x128xbf16, #tpu.memory_space<vmem>>, vector<128x128xbf16>
    %cst_47 = arith.constant dense<0.000000e+00> : vector<32x128xf32>
    %117 = tpu.matmul %115, %116, %cst_47 {dimension_numbers = #tpu.dot_dimension_numbers<[1], [0], [0], [1], [0, 0, 1, 1], [], []>} : vector<32x128xbf16>, vector<128x128xbf16>, vector<32x128xf32> -> vector<32x128xf32>
    %118 = arith.addf %114, %117 : vector<32x128xf32>
    %119 = arith.truncf %111 : vector<32x128xf32> to vector<32x128xbf16>
    %c256_48 = arith.constant 256 : index
    %c0_49 = arith.constant 0 : index
    %120 = vector.load %arg2[%c256_48, %c0_49] : memref<384x128xbf16, #tpu.memory_space<vmem>>, vector<128x128xbf16>
    %cst_50 = arith.constant dense<0.000000e+00> : vector<32x128xf32>
    %121 = tpu.matmul %119, %120, %cst_50 {dimension_numbers = #tpu.dot_dimension_numbers<[1], [0], [0], [1], [0, 0, 1, 1], [], []>} : vector<32x128xbf16>, vector<128x128xbf16>, vector<32x128xf32> -> vector<32x128xf32>
    %122 = arith.addf %118, %121 : vector<32x128xf32>
    %cst_51 = arith.constant dense<0.000000e+00> : vector<128xf32>
    %123 = vector.multi_reduction <add>, %122, %cst_51 [0] : vector<32x128xf32> to vector<128xf32>
    %124 = vector.shape_cast %123 : vector<128xf32> to vector<1x128xf32>
    %cst_52 = arith.constant 3.200000e+01 : f32
    %125 = vector.broadcast %cst_52 : f32 to vector<1x128xf32>
    %126 = arith.divf %124, %125 : vector<1x128xf32>
    %127 = arith.mulf %122, %122 : vector<32x128xf32>
    %cst_53 = arith.constant dense<0.000000e+00> : vector<128xf32>
    %128 = vector.multi_reduction <add>, %127, %cst_53 [0] : vector<32x128xf32> to vector<128xf32>
    %129 = vector.shape_cast %128 : vector<128xf32> to vector<1x128xf32>
    %cst_54 = arith.constant 3.200000e+01 : f32
    %130 = vector.broadcast %cst_54 : f32 to vector<1x128xf32>
    %131 = arith.divf %129, %130 : vector<1x128xf32>
    %132 = tpu.concatenate %126, %131 in 0 : vector<1x128xf32>, vector<1x128xf32> -> vector<2x128xf32>
    %cst_55 = arith.constant dense<0.000000e+00> : vector<2x128xf32>
    %133 = tpu.matmul %132, %58, %cst_55 {dimension_numbers = #tpu.dot_dimension_numbers<[1], [0], [0], [1], [0, 0, 1, 1], [], []>} : vector<2x128xf32>, vector<128x128xf32>, vector<2x128xf32> -> vector<2x128xf32>
    %134 = vector.extract_strided_slice %133 {offsets = [0, 0], sizes = [1, 128], strides = [1, 1]} : vector<2x128xf32> to vector<1x128xf32>
    %135 = vector.extract_strided_slice %133 {offsets = [1, 0], sizes = [1, 128], strides = [1, 1]} : vector<2x128xf32> to vector<1x128xf32>
    %136 = arith.mulf %134, %134 : vector<1x128xf32>
    %137 = arith.subf %135, %136 : vector<1x128xf32>
    %cst_56 = arith.constant 9.99999974E-6 : f32
    %138 = vector.broadcast %cst_56 : f32 to vector<1x128xf32>
    %139 = arith.addf %137, %138 : vector<1x128xf32>
    %140 = math.rsqrt %139 : vector<1x128xf32>
    %141 = vector.broadcast %134 : vector<1x128xf32> to vector<32x128xf32>
    %142 = arith.subf %122, %141 : vector<32x128xf32>
    %c0_57 = arith.constant 0 : index
    %c0_58 = arith.constant 0 : index
    %143 = vector.load %arg5[%c0_57, %c0_58] : memref<1x128xf32, #tpu.memory_space<vmem>>, vector<1x128xf32>
    %144 = arith.mulf %140, %143 : vector<1x128xf32>
    %145 = vector.broadcast %144 : vector<1x128xf32> to vector<32x128xf32>
    %146 = arith.mulf %142, %145 : vector<32x128xf32>
    %c0_59 = arith.constant 0 : index
    %c0_60 = arith.constant 0 : index
    %147 = vector.load %arg6[%c0_59, %c0_60] : memref<1x128xf32, #tpu.memory_space<vmem>>, vector<1x128xf32>
    %148 = vector.broadcast %147 : vector<1x128xf32> to vector<32x128xf32>
    %149 = arith.addf %146, %148 : vector<32x128xf32>
    %150 = arith.addf %149, %59 : vector<32x128xf32>
    %cst_61 = arith.constant 0.000000e+00 : f32
    %151 = vector.broadcast %cst_61 : f32 to vector<32x128xf32>
    %152 = arith.maximumf %150, %151 : vector<32x128xf32>
    %c0_62 = arith.constant 0 : index
    %c0_63 = arith.constant 0 : index
    %153 = vector.load %arg7[%c0_62, %c0_63] : memref<32x128xf32, #tpu.memory_space<vmem>>, vector<32x128xf32>
    tpu.vector_store %arg7[%c0_62, %c0_63], %152 {strides = array<i32>} : memref<32x128xf32, #tpu.memory_space<vmem>>, vector<32x128xf32>,
    return
  }
}

</mosaic_0001>

<bundles_post_ra>
// kernel: tpu_custom_call.1
= control target key start
LH: loop header
LB: loop body
LE: loop exit
PB: predicated region body
PF: predicated region fallthrough
CT: control target
= control target key end

     0   :  { %12 = vsyncpa [#allocation3], 0  ;;  %s2463_s0 = inlined_call_operand.hbm [shape: f32[32,128], index: 0, kind: input, shape index: {}]   ;;  %s2464_s1 = inlined_call_operand.hbm [shape: bf16[384,128], index: 1, kind: input, shape index: {}]   ;;  %s2465_s2 = inlined_call_operand.hbm [shape: bf16[384,128], index: 2, kind: input, shape index: {}]   ;;  %s2466_s3 = inlined_call_operand.vmem [shape: f32[1,128], index: 3, kind: input, shape index: {}]   ;;  %s2467_s4 = inlined_call_operand.vmem [shape: f32[1,128], index: 4, kind: input, shape index: {}]   ;;  %s2468_s5 = inlined_call_operand.vmem [shape: f32[1,128], index: 5, kind: input, shape index: {}]   ;;  %s2469_s6 = inlined_call_operand.vmem [shape: f32[1,128], index: 6, kind: input, shape index: {}]   ;;  %s2470_s7 = inlined_call_operand.hbm [shape: f32[32,128], index: 7, kind: output, shape index: {}]  }
   0x1   :  { %13 = vsyncpa [#allocation6], 0 }
   0x2   :  { %14 = vsyncpa [#allocation4], 0  ;;  %s1987_s24 = smov [#allocation5]  }
   0x3   :  { %s32_s25 = sshll.u32 %s1987_s24, 4  ;;  %s33_s25 = int_to_ptr.vmem [resolvable:$true] %s32_s25 }
   0x4   :  { %s1909_s26 = scalar_lea.vmem %s33_s25, 3072  ;;  %p1914_p1 = scmp.lt.s32.totalorder %s33_s25, %s33_s25 }
   0x5   :  { %p1910_p0 = scmp.ne.s32.totalorder %s33_s25, %s1909_s26  ;;  %p1915_p2 = scmp.lt.s32.totalorder %s1909_s26, %s1909_s26 }
   0x7   :  { %p1916_p3 = por %p1915_p2, %p1914_p1 }
   0x9   :  { %p1917_p4 = pnand %p1916_p3, %p1910_p0 }
   0xb   :  { %1920 = shalt.err (!%p1917_p4)
}
   0xc   :  { %s1988_s27 = smov 64   ;;  %s1989_s28 = smov 4  }
   0xd   :  { %38 = dma.hbm_to_vmem [thread:$0]  %s2464_s1, 3072, %s33_s25, [#allocation6], %s1988_s27, %s1988_s27, %s1989_s28  }
   0xe   :  { %s1990_s8 = smov [#allocation2]  }
   0xf   :  { %s20_s9 = sshll.u32 %s1990_s8, 4  ;;  %s21_s9 = int_to_ptr.vmem [resolvable:$true] %s20_s9 }
  0x10   :  { %s1929_s10 = scalar_lea.vmem %s21_s9, 512  ;;  %p1934_p6 = scmp.lt.s32.totalorder %s21_s9, %s21_s9 }
  0x11   :  { %p1930_p5 = scmp.ne.s32.totalorder %s21_s9, %s1929_s10  ;;  %p1935_p7 = scmp.lt.s32.totalorder %s1929_s10, %s1929_s10 }
  0x13   :  { %p1936_p8 = por %p1935_p7, %p1934_p6 }
  0x15   :  { %p1937_p9 = pnand %p1936_p8, %p1930_p5 }
  0x17   :  { %1940 = shalt.err (!%p1937_p9)
}
  0x18   :  { %s1991_s11 = smov 128   ;;  %s1992_s12 = smov 8  }
  0x19   :  { %26 = dma.hbm_to_vmem [thread:$0]  %s2463_s0, 512, %s21_s9, [#allocation3], %s1991_s11, %s1991_s11, %s1992_s12  }
  0x1a   :  { %s1993_s1 = smov [#allocation7]  }
  0x1b   :  { %s44_s15 = sshll.u32 %s1993_s1, 4  ;;  %s45_s15 = int_to_ptr.vmem [resolvable:$true] %s44_s15 }
  0x1c   :  { %s1949_s16 = scalar_lea.vmem %s45_s15, 3072  ;;  %p1954_p11 = scmp.lt.s32.totalorder %s45_s15, %s45_s15 }
  0x1d   :  { %p1950_p10 = scmp.ne.s32.totalorder %s45_s15, %s1949_s16  ;;  %p1955_p12 = scmp.lt.s32.totalorder %s1949_s16, %s1949_s16 }
  0x1f   :  { %p1956_p13 = por %p1955_p12, %p1954_p11 }
  0x21   :  { %p1957_p0 = pnand %p1956_p13, %p1950_p10 }
  0x23   :  { %1960 = shalt.err (!%p1957_p0)
}
  0x24   :  { %50 = dma.hbm_to_vmem [thread:$0]  %s2465_s2, 3072, %s45_s15, [#allocation6], %s1988_s27, %s1988_s27, %s1989_s28  }
  0x25   :  { %1981 = dma.done.wait [#allocation3], 512  }
  0x26   :  { %1982 = vsyncadd [#allocation3], 4294966784 }
  0x27   :  { %1983 = dma.done.wait [#allocation6], 6144  }
  0x28   :  { %1984 = vsyncadd [#allocation6], 4294961152  ;;  %v1846_v0 = vld [vmem:[#allocation5 + $0x78] sm:$0xff]   ;;  %v1848_v2 = vld [vmem:[#allocation5 + $0x70] sm:$0xff]   ;;  %v69_v6 = vlaneseq  ;;  %vm1994_vm2 = vmmov 1   ;;  %v2493_v63 = vmov 0 }
  0x29   :  { %v1847_v1 = vld [vmem:[#allocation5 + $0x38] sm:$0xff]   ;;  %1644 = vmatprep.subr.bf16.mxu0 %v1846_v0  ;;  %v1849_v3 = vld [vmem:[#allocation5 + $0x30] sm:$0xff]   ;;  %v1850_v4 = vld [vmem:[#allocation5 + $0x68] sm:$0xff]  }
  0x2a   :  { %1664 = vmatprep.subr.bf16.mxu1 %v1847_v1  ;;  %1645 = vmatpush3.bf16.msra.mxu0 %v1846_v0  ;;  %v1851_v5 = vld [vmem:[#allocation5 + $0x28] sm:$0xff]   ;;  %v1852_v7 = vld [vmem:[#allocation5 + $0x60] sm:$0xff]   ;;  %v2052_v9 = vshrl.u32 %v69_v6, 7  ;;  %v1854_v10 = vld [vmem:[#allocation5 + $0x58] sm:$0xff]  }
  0x2b   :  { %1665 = vmatpush3.bf16.msra.mxu1 %v1847_v1  ;;  %1646 = vmatprep.subr.bf16.mxu0 %v1848_v2  ;;  %v1853_v8 = vld [vmem:[#allocation5 + $0x20] sm:$0xff]   ;;  %v1855_v11 = vld [vmem:[#allocation5 + $0x18] sm:$0xff]   ;;  %v1856_v14 = vld [vmem:[#allocation5 + $0x50] sm:$0xff]   ;;  %v335_v1 = vand.u32 127, %v69_v6 }
  0x2c   :  { %1666 = vmatprep.subr.bf16.mxu1 %v1849_v3  ;;  %v78_v12 = vand.u32 15, %v2052_v9  ;;  %v2056_v13 = vadd.s32 16, %v2052_v9  ;;  %v2059_v15 = vadd.s32 8, %v2052_v9  ;;  %v2061_v16 = vld [vmem:[#allocation2] sm:$0xff]  ;;  %v381_v17 = vld [vmem:[#allocation2 + $0x8] sm:$0xff]  ;;  %v2063_v18 = vld [vmem:[#allocation2 + $0x18] sm:$0xff] }
  0x2d   :  { %v1857_v19 = vld [vmem:[#allocation5 + $0x10] sm:$0xff]   ;;  %v428_v20 = vpack.c.bf16 %v381_v17, %v2061_v16  ;;  %v384_v22 = vrot.slane %v2061_v16, 7  ;;  %vm2472_vm1 = vcmp.lt.s32.totalorder %v2052_v9, 1  ;;  %v1858_v23 = vld [vmem:[#allocation5 + $0x48] sm:$0xff]   ;;  %v385_v24 = vrot.slane %v381_v17, 7  ;;  %v1860_v34 = vld [vmem:[#allocation5 + $0x40] sm:$0xff]  }
  0x2e   :  { %1647 = vmatpush3.bf16.msra.mxu0 %v1848_v2  ;;  %vm2066_vm0 = vcmp.ne.s32.totalorder %v78_v12, 0  ;;  %v387_v25 = vrot.slane %v2063_v18, 7  ;;  %v92_v26 = vand.u32 15, %v2056_v13  ;;  %v1859_v27 = vld [vmem:[#allocation5 + $0x8] sm:$0xff]   ;;  %v85_v28 = vand.u32 15, %v2059_v15  ;;  %v2086_v33 = vld [vmem:[#allocation2 + $0x10] sm:$0xff] }
  0x2f   :  { %1667 = vmatpush3.bf16.msra.mxu1 %v1849_v3  ;;  %1648 = vmatprep.subr.bf16.mxu0 %v1850_v4  ;;  %v391_v29 = vsel %vm2472_vm1, %v384_v22, %v385_v24  ;;  %vm2082_vm3 = vmpackc.low %vm1994_vm2, %vm2066_vm0  ;;  %v1861_v35 = vld [vmem:[#allocation5] sm:$0xff]   ;;  %v397_v36 = vrot.slane %v2061_v16, 1  ;;  %v386_v37 = vrot.slane %v2086_v33, 7  ;;  %v398_v38 = vrot.slane %v381_v17, 1  ;;  %v1862_v41 = vld [vmem:[#allocation5 + $0xb8] sm:$0xff]  }
  0x30   :  { %1668 = vmatprep.subr.bf16.mxu1 %v1851_v5  ;;  %1660 = vmatprep.mubr.bf16.mxu0 %v428_v20  ;;  %v392_v30 = vsel %vm2472_vm1, %v387_v25, %v384_v22  ;;  %vm124_vm4 = vcmp.ne.s32.totalorder %v92_v26, 0  ;;  %vm127_vm5 = vcmp.ne.s32.totalorder %v85_v28, 15  ;;  %v399_v39 = vrot.slane %v2086_v33, 1  ;;  %v1863_v48 = vld [vmem:[#allocation5 + $0xb0] sm:$0xff]   ;;  %v1864_v51 = vld [vmem:[#allocation5 + $0xa8] sm:$0xff]   ;;  %v1865_v52 = vld [vmem:[#allocation5 + $0xa0] sm:$0xff]  }
  0x31   :  { %v1459_v32 = vpack.c.bf16 %v391_v29, %v392_v30  ;;  %vm2094_vm6 = vmpackc.low %vm1994_vm2, %vm124_vm4  ;;  %vm2471_vm7 = vcmp.lt.s32.totalorder %v2052_v9, 7  ;;  %v389_v43 = vsel %vm2472_vm1, %v386_v37, %v387_v25  ;;  %v390_v44 = vsel %vm2472_vm1, %v385_v24, %v386_v37  ;;  %v1866_v53 = vld [vmem:[#allocation5 + $0x98] sm:$0xff]   ;;  %v1867_v54 = vld [vmem:[#allocation5 + $0x90] sm:$0xff]  }
  0x32   :  { %1649 = vmatpush3.bf16.msra.mxu0 %v1850_v4  ;;  %vm2100_vm8 = vmpackc.low %vm127_vm5, %vm1994_vm2  ;;  %v403_v45 = vsel %vm2471_vm7, %v398_v38, %v399_v39  ;;  %v404_v46 = vsel %vm2471_vm7, %v397_v36, %v398_v38  ;;  %v429_v47 = vpack.c.bf16 %v2063_v18, %v2086_v33  ;;  %v1462_v49 = vpack.c.bf16 %v389_v43, %v390_v44  ;;  %v1868_v55 = vld [vmem:[#allocation5 + $0x88] sm:$0xff]   ;;  %v1869_v58 = vld [vmem:[#allocation5 + $0x80] sm:$0xff]  }
  0x33   :  { %1669 = vmatpush3.bf16.msra.mxu1 %v1851_v5  ;;  %1650 = vmatprep.subr.bf16.mxu0 %v1852_v7  ;;  %v1473_v50 = vpack.c.bf16 %v403_v45, %v404_v46  ;;  %v2119_v56 = vadd.s32 24, %v2052_v9  ;;  %v400_v57 = vrot.slane %v2063_v18, 1  ;;  %v141_v0 = vadd.s32 120, %v2052_v9  ;;  %v1890_v31 = vld [vmem:[#allocation7 + $0x98] sm:$0xff]   ;;  %v1891_v40 = vld [vmem:[#allocation7 + $0x90] sm:$0xff]   ;;  %v1892_v42 = vld [vmem:[#allocation7 + $0x88] sm:$0xff]  }
  0x34   :  { %1670 = vmatprep.subr.bf16.mxu1 %v1853_v8  ;;  %1680 = vmatprep.mubr.msk.bf16.mxu1 %vm2082_vm3, %v1459_v32  ;;  %v2136_v3 = vand.u32 7, %v335_v1  ;;  %v140_v4 = vadd.s32 112, %v2052_v9  ;;  %v1995_v5 = vmov 0.0   ;;  %v137_v18 = vadd.s32 88, %v2052_v9 }
  0x35   :  { %v99_v59 = vand.u32 15, %v2119_v56  ;;  %v402_v60 = vsel %vm2471_vm7, %v399_v39, %v400_v57  ;;  %v405_v61 = vsel %vm2471_vm7, %v400_v57, %v397_v36  ;;  %v251_v2 = vand.u32 7, %v141_v0 }
  0x36   :  { %1651 = vmatpush3.bf16.msra.mxu0 %v1852_v7  ;;  %v1476_v62 = vpack.c.bf16 %v405_v61, %v402_v60  ;;  %v223_v20 = vand.u32 7, %v137_v18  ;;  %v136_v21 = vadd.s32 80, %v2052_v9  ;;  %v135_v24 = vadd.s32 72, %v2052_v9  ;;  %v1893_v7 = vld [vmem:[#allocation7 + $0x80] sm:$0xff]  }
  0x37   :  { %1671 = vmatpush3.bf16.msra.mxu1 %v1853_v8  ;;  %1652 = vmatprep.subr.bf16.mxu0 %v1854_v10  ;;  %vm129_vm9 = vcmp.ne.s32.totalorder %v99_v59, 15  ;;  %vm2141_vm11 = vcmp.eq.s32.totalorder %v251_v2, %v2136_v3  ;;  %v244_v8 = vand.u32 7, %v140_v4  ;;  %v133_v30 = vadd.s32 56, %v2052_v9 }
  0x38   :  { %1672 = vmatprep.subr.bf16.mxu1 %v1855_v11  ;;  %vm2128_vm10 = vmpackc.low %vm129_vm9, %vm1994_vm2  ;;  %vm2181_vm15 = vcmp.eq.s32.totalorder %v223_v20, %v2136_v3  ;;  %v209_v26 = vand.u32 7, %v135_v24  ;;  %v2509_v32 = vmov 0  ;;  %v2511_v36 = vmov 0 }
  0x39   :  { %v2494_v63 = vsel %vm2128_vm10, 4294967295, %v2493_v63  ;;  %vm2151_vm12 = vcmp.eq.s32.totalorder %v244_v8, %v2136_v3  ;;  %v131_v38 = vadd.s32 40, %v2052_v9  ;;  %v130_v39 = vadd.s32 32, %v2052_v9 }
  0x3a   :  { %1653 = vmatpush3.bf16.msra.mxu0 %v1854_v10  ;;  %v139_v10 = vadd.s32 104, %v2052_v9  ;;  %vm2201_vm2 = vcmp.eq.s32.totalorder %v209_v26, %v2136_v3  ;;  %v2513_v43 = vmov 0  ;;  %v2515_v46 = vmov 0 }
  0x3b   :  { %1673 = vmatpush3.bf16.msra.mxu1 %v1855_v11  ;;  %1654 = vmatprep.subr.bf16.mxu0 %v1856_v14  ;;  %v1996_v11 = vmov 0.0625   ;;  %v181_v44 = vand.u32 7, %v131_v38  ;;  %v174_v45 = vand.u32 7, %v130_v39 }
  0x3c   :  { %1674 = vmatprep.subr.bf16.mxu1 %v1857_v19  ;;  %v237_v12 = vand.u32 7, %v139_v10 }
  0x3d   :  { %vm2242_vm7 = vcmp.eq.s32.totalorder %v181_v44, %v2136_v3  ;;  %vm2247_vm1 = vcmp.eq.s32.totalorder %v174_v45, %v2136_v3 }
  0x3e   :  { %1655 = vmatpush3.bf16.msra.mxu0 %v1856_v14  ;;  %v138_v14 = vadd.s32 96, %v2052_v9  ;;  %vm2161_vm13 = vcmp.eq.s32.totalorder %v237_v12, %v2136_v3  ;;  %v2516_v46 = vsel %vm2242_vm7, 4294967295, %v2515_v46 }
  0x3f   :  { %1675 = vmatpush3.bf16.msra.mxu1 %v1857_v19  ;;  %1656 = vmatprep.subr.bf16.mxu0 %v1858_v23 }
  0x40   :  { %1676 = vmatprep.subr.bf16.mxu1 %v1859_v27  ;;  %v230_v17 = vand.u32 7, %v138_v14 }
  0x42   :  { %1657 = vmatpush3.bf16.msra.mxu0 %v1858_v23  ;;  %vm2171_vm14 = vcmp.eq.s32.totalorder %v230_v17, %v2136_v3  ;;  %v216_v23 = vand.u32 7, %v136_v21 }
  0x43   :  { %1677 = vmatpush3.bf16.msra.mxu1 %v1859_v27  ;;  %1658 = vmatprep.subr.bf16.mxu0 %v1860_v34  ;;  %v134_v27 = vadd.s32 64, %v2052_v9 }
  0x44   :  { %1678 = vmatprep.subr.bf16.mxu1 %v1861_v35  ;;  %vm2191_vm0 = vcmp.eq.s32.totalorder %v216_v23, %v2136_v3 }
  0x45   :  { %v202_v29 = vand.u32 7, %v134_v27 }
  0x46   :  { %1659 = vmatpush3.bf16.msra.mxu0 %v1860_v34  ;;  %v195_v34 = vand.u32 7, %v133_v30 }
  0x47   :  { %1679 = vmatpush3.bf16.msra.mxu1 %v1861_v35  ;;  %1684 = vmatprep.subr.bf16.mxu0 %v1862_v41  ;;  %vm2211_vm4 = vcmp.eq.s32.totalorder %v202_v29, %v2136_v3  ;;  %v132_v35 = vadd.s32 48, %v2052_v9 }
  0x48   :  { %1704 = vmatprep.subr.mxu1 %v1995_v5  ;;  %v2510_v32 = vsel %vm2211_vm4, 4294967295, %v2509_v32  ;;  %vm2221_vm5 = vcmp.eq.s32.totalorder %v195_v34, %v2136_v3 }
  0x49   :  { %1661 = vmatmul.mubr.bf16.vlgmr.msra.gmra.mxu0 %v429_v47  ;;  %v2512_v36 = vsel %vm2221_vm5, 4294967295, %v2511_v36  ;;  %v188_v37 = vand.u32 7, %v132_v35  ;;  %v2517_v47 = vmov 0 }
  0x4a   :  { %1681 = vmatmul.mubr.msk.bf16.vlgmr.msra.gmra.mxu1 %vm2094_vm6, %v1462_v49  ;;  %1685 = vmatpush3.bf16.msra.mxu0 %v1862_v41  ;;  %v167_v41 = vand.u32 7, %v2119_v56  ;;  %v2518_v47 = vsel %vm2247_vm1, 4294967295, %v2517_v47  ;;  %v2519_v49 = vmov 0 }
  0x4b   :  { %1686 = vmatprep.subr.bf16.mxu0 %v1863_v48  ;;  %1700 = vmatprep.mubr.msk.bf16.mxu0 %vm2100_vm8, %v1473_v50  ;;  %vm2233_vm9 = vcmp.eq.s32.totalorder %v188_v37, %v2136_v3  ;;  %v153_v50 = vand.u32 7, %v2059_v15  ;;  %v2523_v15 = vmov 0 }
  0x4c   :  { %1705 = vmatpush3.msk.msra.mxu1 %vm2141_vm11, %v1996_v11  ;;  %v2514_v43 = vsel %vm2233_vm9, 4294967295, %v2513_v43 }
  0x4d   :  { %1706 = vmatprep.subr.mxu1 %v1995_v5 }
  0x4e   :  { %1687 = vmatpush3.bf16.msra.mxu0 %v1863_v48  ;;  %1707 = vmatpush3.msk.msra.mxu1 %vm2151_vm12, %v1996_v11  ;;  %v160_v48 = vand.u32 7, %v2056_v13  ;;  %v2521_v13 = vmov 0 }
  0x4f   :  { %1688 = vmatprep.subr.bf16.mxu0 %v1864_v51  ;;  %1708 = vmatprep.subr.mxu1 %v1995_v5 }
  0x50   :  { %1709 = vmatpush3.msk.msra.mxu1 %vm2161_vm13, %v1996_v11 }
  0x51   :  { %1710 = vmatprep.subr.mxu1 %v1995_v5 }
  0x52   :  { %1689 = vmatpush3.bf16.msra.mxu0 %v1864_v51  ;;  %1711 = vmatpush3.msk.msra.mxu1 %vm2171_vm14, %v1996_v11  ;;  %v146_v51 = vand.u32 7, %v2052_v9 }
  0x53   :  { %1690 = vmatprep.subr.bf16.mxu0 %v1865_v52  ;;  %1712 = vmatprep.subr.mxu1 %v1995_v5 }
  0x54   :  { %1713 = vmatpush3.msk.msra.mxu1 %vm2181_vm15, %v1996_v11 }
  0x55   :  { %1714 = vmatprep.subr.mxu1 %v1995_v5 }
  0x56   :  { %1691 = vmatpush3.bf16.msra.mxu0 %v1865_v52  ;;  %1715 = vmatpush3.msk.msra.mxu1 %vm2191_vm0, %v1996_v11  ;;  %v2525_v52 = vmov 0 }
  0x57   :  { %1692 = vmatprep.subr.bf16.mxu0 %v1866_v53  ;;  %1716 = vmatprep.subr.mxu1 %v1995_v5 }
  0x58   :  { %1717 = vmatpush3.msk.msra.mxu1 %vm2201_vm2, %v1996_v11 }
  0x59   :  { %1718 = vmatprep.subr.mxu1 %v1995_v5 }
  0x5a   :  { %1693 = vmatpush3.bf16.msra.mxu0 %v1866_v53  ;;  %1719 = vmatpush3.msk.msra.mxu1 %vm2211_vm4, %v1996_v11 }
  0x5b   :  { %1694 = vmatprep.subr.bf16.mxu0 %v1867_v54  ;;  %1720 = vmatprep.subr.mxu1 %v1995_v5 }
  0x5c   :  { %1721 = vmatpush3.msk.msra.mxu1 %vm2221_vm5, %v1996_v11  ;;  %vm2531_vm5 = vcmp.lt.s32.totalorder %v2052_v9, 7 }
  0x5d   :  { %1722 = vmatprep.subr.mxu1 %v1995_v5  ;;  %vm2532_vm4 = vmmov %vm2531_vm5 }
  0x5e   :  { %1695 = vmatpush3.bf16.msra.mxu0 %v1867_v54  ;;  %1723 = vmatpush3.msk.msra.mxu1 %vm2233_vm9, %v1996_v11  ;;  %vm2259_vm9 = vcmp.eq.s32.totalorder %v167_v41, %v2136_v3 }
  0x5f   :  { %1696 = vmatprep.subr.bf16.mxu0 %v1868_v55  ;;  %1724 = vmatprep.subr.mxu1 %v1995_v5  ;;  %v2520_v49 = vsel %vm2259_vm9, 4294967295, %v2519_v49 }
  0x60   :  { %1725 = vmatpush3.msk.msra.mxu1 %vm2242_vm7, %v1996_v11  ;;  %vm2279_vm7 = vcmp.eq.s32.totalorder %v153_v50, %v2136_v3 }
  0x61   :  { %1726 = vmatprep.subr.mxu1 %v1995_v5  ;;  %v2524_v15 = vsel %vm2279_vm7, 4294967295, %v2523_v15 }
  0x62   :  { %1697 = vmatpush3.bf16.msra.mxu0 %v1868_v55  ;;  %1727 = vmatpush3.msk.msra.mxu1 %vm2247_vm1, %v1996_v11  ;;  %vm2288_vm1 = vcmp.eq.s32.totalorder %v146_v51, %v2136_v3 }
  0x63   :  { %1698 = vmatprep.subr.bf16.mxu0 %v1869_v58  ;;  %1728 = vmatprep.subr.mxu1 %v1995_v5  ;;  %v2526_v52 = vsel %vm2288_vm1, 4294967295, %v2525_v52 }
  0x64   :  { %1729 = vmatpush3.msk.msra.mxu1 %vm2259_vm9, %v1996_v11 }
  0x65   :  { %1730 = vmatprep.subr.mxu1 %v1995_v5 }
  0x66   :  { %1699 = vmatpush3.bf16.msra.mxu0 %v1869_v58 }
  0x69   :  { %1701 = vmatmul.mubr.msk.bf16.vlgmr.msra.gmra.mxu0 %vm2128_vm10, %v1476_v62  ;;  %vm2475_vm10 = vmmov 0  }
  0x6a   :  { %1736 = vmatprep.mubr.msk.f32.mxu1 %vm2475_vm10, %v1995_v5  ;;  %vm2269_vm10 = vcmp.eq.s32.totalorder %v160_v48, %v2136_v3 }
  0x6b   :  { %v2522_v13 = vsel %vm2269_vm10, 4294967295, %v2521_v13  ;;  %1731 = vmatpush3.msk.msra.mxu1 %vm2269_vm10, %v1996_v11 }
  0x6c   :  { %1732 = vmatprep.subr.mxu1 %v1995_v5 }
  0x6d   :  { %1733 = vmatpush3.msk.msra.mxu1 %vm2279_vm7, %v1996_v11 }
  0x6e   :  { %1734 = vmatprep.subr.mxu1 %v1995_v5 }
  0x6f   :  { %1735 = vmatpush3.msk.msra.mxu1 %vm2288_vm1, %v1996_v11  ;;  %vm2479_vm1 = vcmask 1040384  }
 0x109   :  { %v1662_v53 = vpop.f32.mrf.mxu0 }
 0x10a   :  { %v1682_v54 = vpop.f32.mrf.mxu1 }
 0x10b   :  { %v528_v55 = vpop.f32.mrf.mxu0  ;;  %v634_v2 = vadd.f32 %v1682_v54, %v1662_v53 }
 0x10c   :  { %v625_v56 = vpop.f32.mrf.mxu1 }
 0x10d   :  { %v1663_v57 = vpop.f32.mrf.mxu0  ;;  %v626_v0 = vadd.f32 %v625_v56, %v528_v55 }
 0x10e   :  { %v1683_v58 = vpop.f32.mrf.mxu1 }
 0x10f   :  { %v531_v59 = vpop.f32.mrf.mxu0  ;;  %v637_v10 = vadd.f32 %v1683_v58, %v1663_v57  ;;  %v1870_v58 = vld [vmem:[#allocation7 + $0x78] sm:$0xff]  }
 0x110   :  { %v628_v61 = vpop.f32.mrf.mxu1  ;;  %1739 = vmatprep.subr.bf16.mxu0 %v1870_v58 }
 0x111   :  { %v629_v3 = vadd.f32 %v628_v61, %v531_v59  ;;  %1740 = vmatpush3.bf16.msra.mxu0 %v1870_v58  ;;  %v1871_v59 = vld [vmem:[#allocation7 + $0x70] sm:$0xff]   ;;  %v1873_v61 = vld [vmem:[#allocation7 + $0x68] sm:$0xff]  }
 0x112   :  { %1741 = vmatprep.subr.bf16.mxu0 %v1871_v59 }
 0x115   :  { %1742 = vmatpush3.bf16.msra.mxu0 %v1871_v59 }
 0x116   :  { %1743 = vmatprep.subr.bf16.mxu0 %v1873_v61 }
 0x119   :  { %1744 = vmatpush3.bf16.msra.mxu0 %v1873_v61 }
 0x129   :  { %v1702_v60 = vpop.f32.mrf.mxu0 }
 0x12a   :  { %v2301_v12 = vadd.f32 %v1702_v60, %v634_v2  ;;  %v1872_v60 = vld [vmem:[#allocation7 + $0x38] sm:$0xff]  }
 0x12b   :  { %v740_v62 = vpop.f32.mrf.mxu0  ;;  %1759 = vmatprep.subr.bf16.mxu1 %v1872_v60  ;;  %v1877_v2 = vld [vmem:[#allocation7 + $0x58] sm:$0xff]  }
 0x12c   :  { %v2299_v4 = vadd.f32 %v740_v62, %v626_v0  ;;  %v772_v23 = vmul.f32 %v2301_v12, %v2301_v12  ;;  %v1874_v62 = vld [vmem:[#allocation7 + $0x30] sm:$0xff]   ;;  %v1875_v0 = vld [vmem:[#allocation7 + $0x60] sm:$0xff]  }
 0x12d   :  { %v1703_v1 = vpop.f32.mrf.mxu0  ;;  %1745 = vmatprep.subr.bf16.mxu0 %v1875_v0 }
 0x12e   :  { %v770_v17 = vmul.f32 %v2299_v4, %v2299_v4  ;;  %v2307_v18 = vadd.f32 %v1703_v1, %v637_v10  ;;  %v1876_v1 = vld [vmem:[#allocation7 + $0x28] sm:$0xff]   ;;  %1746 = vmatpush3.bf16.msra.mxu0 %v1875_v0  ;;  %v1880_v10 = vld [vmem:[#allocation7 + $0x18] sm:$0xff]  }
 0x12f   :  { %v743_v8 = vpop.f32.mrf.mxu0  ;;  %1747 = vmatprep.subr.bf16.mxu0 %v1877_v2 }
 0x130   :  { %v2303_v14 = vadd.f32 %v743_v8, %v629_v3  ;;  %v773_v27 = vmul.f32 %v2307_v18, %v2307_v18  ;;  %v1878_v3 = vld [vmem:[#allocation7 + $0x20] sm:$0xff]   ;;  %v1879_v8 = vld [vmem:[#allocation7 + $0x50] sm:$0xff]  }
 0x132   :  { %v759_v20 = vadd.f32 %v2303_v14, %v2299_v4  ;;  %v771_v21 = vmul.f32 %v2303_v14, %v2303_v14  ;;  %1748 = vmatpush3.bf16.msra.mxu0 %v1877_v2 }
 0x133   :  { %1749 = vmatprep.subr.bf16.mxu0 %v1879_v8 }
 0x134   :  { %v760_v24 = vadd.f32 %v759_v20, %v2301_v12  ;;  %v774_v26 = vadd.f32 %v771_v21, %v770_v17  ;;  %v1881_v17 = vld [vmem:[#allocation7 + $0x48] sm:$0xff]   ;;  %v1882_v20 = vld [vmem:[#allocation7 + $0x10] sm:$0xff]   ;;  %v1883_v21 = vld [vmem:[#allocation7 + $0x40] sm:$0xff]  }
 0x136   :  { %v761_v29 = vadd.f32 %v760_v24, %v2307_v18  ;;  %v775_v30 = vadd.f32 %v774_v26, %v772_v23  ;;  %1750 = vmatpush3.bf16.msra.mxu0 %v1879_v8  ;;  %v1884_v23 = vld [vmem:[#allocation7 + $0x8] sm:$0xff]   ;;  %v1885_v24 = vld [vmem:[#allocation7] sm:$0xff]   ;;  %v1886_v26 = vld [vmem:[#allocation7 + $0xb8] sm:$0xff]  }
 0x137   :  { %1751 = vmatprep.subr.bf16.mxu0 %v1881_v17 }
 0x138   :  { %v762_v34 = vrot.slane %v761_v29, 4  ;;  %v776_v35 = vadd.f32 %v775_v30, %v773_v27 }
 0x13a   :  { %v763_v37 = vadd.f32 %v762_v34, %v761_v29  ;;  %v777_v38 = vrot.slane %v776_v35, 4  ;;  %1752 = vmatpush3.bf16.msra.mxu0 %v1881_v17 }
 0x13b   :  { %1753 = vmatprep.subr.bf16.mxu0 %v1883_v21 }
 0x13c   :  { %v764_v39 = vrot.slane %v763_v37, 2  ;;  %v778_v41 = vadd.f32 %v777_v38, %v776_v35  ;;  %v865_v38 = vsub.s32 0, %v2052_v9 }
 0x13e   :  { %v765_v44 = vadd.f32 %v764_v39, %v763_v37  ;;  %v779_v45 = vrot.slane %v778_v41, 2  ;;  %1754 = vmatpush3.bf16.msra.mxu0 %v1883_v21 }
 0x13f   :  { %1779 = vmatprep.subr.bf16.mxu0 %v1886_v26 }
 0x140   :  { %v766_v48 = vrot.slane %v765_v44, 1  ;;  %v780_v50 = vadd.f32 %v779_v45, %v778_v41  ;;  %v1494_v41 = vld [vmem:[%s2466_s3] ss:$0 sm:$0xff] }
 0x142   :  { %v767_v51 = vadd.f32 %v766_v48, %v765_v44  ;;  %v781_v53 = vrot.slane %v780_v50, 1  ;;  %v881_v44 = vsub.s32 1, %v2052_v9 }
 0x144   :  { %v782_v54 = vadd.f32 %v781_v53, %v780_v50  ;;  %v769_v55 = vmul.f32 0.03125, %v767_v51 }
 0x146   :  { %v783_v56 = vmul.f32 0.03125, %v782_v54 }
 0x148   :  { %v785_v57 = vsel %vm2479_vm1, %v769_v55, %v783_v56  ;;  %v1495_v56 = vld [vmem:[%s2467_s4] ss:$0 sm:$0xff]  ;;  %vm2527_vm1 = vcmp.lt.s32.totalorder %v2052_v9, 1 }
 0x149   :  { %1737 = vmatmul.mubr.f32.vlgmr.msra.gmra.mxu1 %v785_v57  ;;  %vm2528_vm7 = vmmov %vm2527_vm1 }
 0x14a   :  { %1760 = vmatpush3.bf16.msra.mxu1 %v1872_v60  ;;  %vm2529_vm10 = vmmov %vm2527_vm1 }
 0x14b   :  { %1761 = vmatprep.subr.bf16.mxu1 %v1874_v62  ;;  %vm2530_vm9 = vmmov %vm2527_vm1 }
 0x14e   :  { %1762 = vmatpush3.bf16.msra.mxu1 %v1874_v62 }
 0x14f   :  { %1763 = vmatprep.subr.bf16.mxu1 %v1876_v1 }
 0x152   :  { %1764 = vmatpush3.bf16.msra.mxu1 %v1876_v1 }
 0x153   :  { %1765 = vmatprep.subr.bf16.mxu1 %v1878_v3 }
 0x156   :  { %1766 = vmatpush3.bf16.msra.mxu1 %v1878_v3 }
 0x157   :  { %1767 = vmatprep.subr.bf16.mxu1 %v1880_v10 }
 0x15a   :  { %1768 = vmatpush3.bf16.msra.mxu1 %v1880_v10 }
 0x15b   :  { %1769 = vmatprep.subr.bf16.mxu1 %v1882_v20 }
 0x15e   :  { %1770 = vmatpush3.bf16.msra.mxu1 %v1882_v20 }
 0x15f   :  { %1771 = vmatprep.subr.bf16.mxu1 %v1884_v23 }
 0x162   :  { %1772 = vmatpush3.bf16.msra.mxu1 %v1884_v23  ;;  %v1887_v23 = vld [vmem:[#allocation7 + $0xb0] sm:$0xff]  }
 0x163   :  { %1773 = vmatprep.subr.bf16.mxu1 %v1885_v24 }
 0x166   :  { %1774 = vmatpush3.bf16.msra.mxu1 %v1885_v24 }
 0x167   :  { %1799 = vmatprep.subr.mxu1 %v1995_v5 }
 0x209   :  { %v852_v27 = vpop.f32.mrf.mxu1 }
 0x20a   :  { %v856_v29 = vmul.f32 %v852_v27, %v852_v27  ;;  %v866_v39 = vrot.slane %v852_v27, %v865_v38 }
 0x20b   :  { %v1738_v30 = vpop.f32.mrf.mxu1 }
 0x20c   :  { %v858_v34 = vrot.slane %v856_v29, 7  ;;  %v867_v50 = vsub.f32 %v2299_v4, %v866_v39  ;;  %v868_v51 = vsub.f32 %v2303_v14, %v866_v39  ;;  %v869_v53 = vsub.f32 %v2301_v12, %v866_v39 }
 0x20d   :  { %v870_v54 = vsub.f32 %v2307_v18, %v866_v39 }
 0x20e   :  { %v860_v35 = vsub.f32 %v852_v27, %v858_v34 }
 0x210   :  { %v861_v37 = vadd.f32 1e-05, %v860_v35 }
 0x212   :  { %1894 = vrsqrt.f32 %v861_v37 }
 0x21f   :  { %v1895_v45 = vpop.eup %1894 }
 0x220   :  { %v878_v48 = vmul.f32 %v1895_v45, %v1494_v41 }
 0x222   :  { %v882_v55 = vrot.slane %v878_v48, %v881_v44 }
 0x224   :  { %v885_v57 = vmul.f32 %v882_v55, %v869_v53  ;;  %v886_v58 = vmul.f32 %v882_v55, %v870_v54  ;;  %v883_v59 = vmul.f32 %v882_v55, %v867_v50  ;;  %v884_v60 = vmul.f32 %v882_v55, %v868_v51  ;;  %v1888_v50 = vld [vmem:[#allocation7 + $0xa8] sm:$0xff]  }
 0x226   :  { %v894_v61 = vadd.f32 %v1495_v56, %v883_v59  ;;  %v895_v62 = vadd.f32 %v1495_v56, %v884_v60  ;;  %v896_v4 = vadd.f32 %v1495_v56, %v885_v57  ;;  %v897_v0 = vadd.f32 %v1495_v56, %v886_v58 }
 0x228   :  { %v2337_v14 = vmax.f32 %v894_v61, 0.0  ;;  %v899_v12 = vmax.f32 %v895_v62, 0.0  ;;  %v2339_v1 = vmax.f32 %v896_v4, 0.0  ;;  %v2341_v18 = vmax.f32 %v897_v0, 0.0 }
 0x22a   :  { %v944_v2 = vpack.c.bf16 %v899_v12, %v2337_v14  ;;  %v904_v3 = vrot.slane %v2339_v1, 7  ;;  %v945_v8 = vpack.c.bf16 %v2341_v18, %v2339_v1  ;;  %v902_v10 = vrot.slane %v2337_v14, 7 }
 0x22b   :  { %v903_v17 = vrot.slane %v899_v12, 7  ;;  %v905_v20 = vrot.slane %v2341_v18, 7  ;;  %v914_v21 = vrot.slane %v2337_v14, 1  ;;  %v915_v24 = vrot.slane %v899_v12, 1 }
 0x22c   :  { %1755 = vmatprep.mubr.bf16.mxu0 %v944_v2  ;;  %v916_v27 = vrot.slane %v2339_v1, 1  ;;  %v917_v6 = vrot.slane %v2341_v18, 1 }
 0x22d   :  { %1756 = vmatmul.mubr.bf16.vlgmr.msra.gmra.mxu0 %v945_v8  ;;  %v908_v29 = vsel %vm2527_vm1, %v902_v10, %v903_v17  ;;  %v909_v30 = vsel %vm2528_vm7, %v905_v20, %v902_v10  ;;  %v906_v34 = vsel %vm2529_vm10, %v904_v3, %v905_v20  ;;  %v907_v35 = vsel %vm2530_vm9, %v903_v17, %v904_v3  ;;  %vm2538_vm10 = vmmov %vm2532_vm4 }
 0x22e   :  { %1780 = vmatpush3.bf16.msra.mxu0 %v1886_v26  ;;  %v1513_v37 = vpack.c.bf16 %v908_v29, %v909_v30  ;;  %v919_v39 = vsel %vm2531_vm5, %v915_v24, %v916_v27  ;;  %v920_v41 = vsel %vm2532_vm4, %v914_v21, %v915_v24  ;;  %v1516_v45 = vpack.c.bf16 %v906_v34, %v907_v35  ;;  %v1889_v26 = vld [vmem:[#allocation7 + $0xa0] sm:$0xff]  }
 0x22f   :  { %v1527_v48 = vpack.c.bf16 %v919_v39, %v920_v41  ;;  %1781 = vmatprep.subr.bf16.mxu0 %v1887_v23  ;;  %vm2533_vm1 = vmmov 0   ;;  %vm2536_vm7 = vnez %v2514_v43  ;;  %v918_v16 = vsel %vm2538_vm10, %v916_v27, %v917_v6 }
 0x230   :  { %1775 = vmatprep.mubr.msk.bf16.mxu1 %vm2082_vm3, %v1513_v37  ;;  %vm2534_vm3 = vnez %v2510_v32 }
 0x231   :  { %1795 = vmatprep.mubr.msk.bf16.mxu0 %vm2100_vm8, %v1527_v48  ;;  %1776 = vmatmul.mubr.msk.bf16.vlgmr.msra.gmra.mxu1 %vm2094_vm6, %v1516_v45  ;;  %vm2535_vm6 = vnez %v2512_v36  ;;  %vm2537_vm8 = vnez %v2516_v46 }
 0x232   :  { %1782 = vmatpush3.bf16.msra.mxu0 %v1887_v23  ;;  %1800 = vmatpush3.msk.msra.mxu1 %vm2141_vm11, %v1996_v11  ;;  %vm2539_vm11 = vmmov %vm2532_vm4  ;;  %vm2546_vm4 = vcmask 1040384  }
 0x233   :  { %1783 = vmatprep.subr.bf16.mxu0 %v1888_v50  ;;  %1801 = vmatprep.subr.mxu1 %v1995_v5  ;;  %v921_v19 = vsel %vm2539_vm11, %v917_v6, %v914_v21 }
 0x234   :  { %1802 = vmatpush3.msk.msra.mxu1 %vm2151_vm12, %v1996_v11  ;;  %1831 = vmatprep.mubr.msk.f32.mxu1 %vm2533_vm1, %v1995_v5  ;;  %vm2540_vm12 = vnez %v2518_v47  ;;  %v1530_v22 = vpack.c.bf16 %v921_v19, %v918_v16 }
 0x235   :  { %1803 = vmatprep.subr.mxu1 %v1995_v5 }
 0x236   :  { %1784 = vmatpush3.bf16.msra.mxu0 %v1888_v50  ;;  %1804 = vmatpush3.msk.msra.mxu1 %vm2161_vm13, %v1996_v11  ;;  %vm2541_vm13 = vnez %v2520_v49 }
 0x237   :  { %1785 = vmatprep.subr.bf16.mxu0 %v1889_v26  ;;  %1805 = vmatprep.subr.mxu1 %v1995_v5 }
 0x238   :  { %1806 = vmatpush3.msk.msra.mxu1 %vm2171_vm14, %v1996_v11  ;;  %vm2542_vm14 = vnez %v2522_v13 }
 0x239   :  { %1807 = vmatprep.subr.mxu1 %v1995_v5 }
 0x23a   :  { %1786 = vmatpush3.bf16.msra.mxu0 %v1889_v26  ;;  %1808 = vmatpush3.msk.msra.mxu1 %vm2181_vm15, %v1996_v11  ;;  %vm2543_vm15 = vnez %v2494_v63 }
 0x23b   :  { %1787 = vmatprep.subr.bf16.mxu0 %v1890_v31  ;;  %1809 = vmatprep.subr.mxu1 %v1995_v5 }
 0x23c   :  { %1810 = vmatpush3.msk.msra.mxu1 %vm2191_vm0, %v1996_v11  ;;  %vm2544_vm0 = vnez %v2524_v15 }
 0x23d   :  { %1811 = vmatprep.subr.mxu1 %v1995_v5 }
 0x23e   :  { %1788 = vmatpush3.bf16.msra.mxu0 %v1890_v31  ;;  %1812 = vmatpush3.msk.msra.mxu1 %vm2201_vm2, %v1996_v11  ;;  %vm2545_vm2 = vnez %v2526_v52  ;;  %v1548_v31 = vld [vmem:[%s2468_s5] ss:$0 sm:$0xff]  ;;  %s1998_s5 = smov [#allocation8]  }
 0x23f   :  { %1789 = vmatprep.subr.bf16.mxu0 %v1891_v40  ;;  %1813 = vmatprep.subr.mxu1 %v1995_v5  ;;  %s1429_s23 = sshll.u32 %s1998_s5, 4  ;;  %s1430_s23 = int_to_ptr.vmem [resolvable:$true] %s1429_s23 }
 0x240   :  { %1814 = vmatpush3.msk.msra.mxu1 %vm2534_vm3, %v1996_v11  ;;  %p1966_p2 = scmp.lt.s32.totalorder %s1430_s23, %s1430_s23 }
 0x241   :  { %1815 = vmatprep.subr.mxu1 %v1995_v5 }
 0x242   :  { %1790 = vmatpush3.bf16.msra.mxu0 %v1891_v40  ;;  %1816 = vmatpush3.msk.msra.mxu1 %vm2535_vm6, %v1996_v11 }
 0x243   :  { %1791 = vmatprep.subr.bf16.mxu0 %v1892_v42  ;;  %1817 = vmatprep.subr.mxu1 %v1995_v5 }
 0x244   :  { %1818 = vmatpush3.msk.msra.mxu1 %vm2536_vm7, %v1996_v11 }
 0x245   :  { %1819 = vmatprep.subr.mxu1 %v1995_v5 }
 0x246   :  { %1792 = vmatpush3.bf16.msra.mxu0 %v1892_v42  ;;  %1820 = vmatpush3.msk.msra.mxu1 %vm2537_vm8, %v1996_v11 }
 0x247   :  { %1793 = vmatprep.subr.bf16.mxu0 %v1893_v7  ;;  %1821 = vmatprep.subr.mxu1 %v1995_v5 }
 0x248   :  { %1822 = vmatpush3.msk.msra.mxu1 %vm2540_vm12, %v1996_v11 }
 0x249   :  { %1823 = vmatprep.subr.mxu1 %v1995_v5 }
 0x24a   :  { %1794 = vmatpush3.bf16.msra.mxu0 %v1893_v7  ;;  %1824 = vmatpush3.msk.msra.mxu1 %vm2541_vm13, %v1996_v11 }
 0x24b   :  { %1825 = vmatprep.subr.mxu1 %v1995_v5 }
 0x24c   :  { %1826 = vmatpush3.msk.msra.mxu1 %vm2542_vm14, %v1996_v11 }
 0x24d   :  { %1796 = vmatmul.mubr.msk.bf16.vlgmr.msra.gmra.mxu0 %vm2543_vm15, %v1530_v22  ;;  %1827 = vmatprep.subr.mxu1 %v1995_v5 }
 0x24e   :  { %1828 = vmatpush3.msk.msra.mxu1 %vm2544_vm0, %v1996_v11 }
 0x24f   :  { %1829 = vmatprep.subr.mxu1 %v1995_v5 }
 0x250   :  { %1830 = vmatpush3.msk.msra.mxu1 %vm2545_vm2, %v1996_v11 }
 0x2ed   :  { %v1757_v25 = vpop.f32.mrf.mxu0 }
 0x2ef   :  { %v1044_v28 = vpop.f32.mrf.mxu0 }
 0x2f1   :  { %v1777_v32 = vpop.f32.mrf.mxu1  ;;  %v1758_v36 = vpop.f32.mrf.mxu0 }
 0x2f2   :  { %v1150_v15 = vadd.f32 %v1777_v32, %v1757_v25  ;;  %v1549_v25 = vld [vmem:[%s2469_s6] ss:$0 sm:$0xff]  ;;  %s1961_s6 = scalar_lea.vmem %s1430_s23, 512 }
 0x2f3   :  { %v1141_v43 = vpop.f32.mrf.mxu1  ;;  %v1047_v46 = vpop.f32.mrf.mxu0  ;;  %p1962_p1 = scmp.ne.s32.totalorder %s1430_s23, %s1961_s6  ;;  %p1967_p3 = scmp.lt.s32.totalorder %s1961_s6, %s1961_s6 }
 0x2f4   :  { %v1142_v51 = vadd.f32 %v1141_v43, %v1044_v28 }
 0x2f5   :  { %v1778_v63 = vpop.f32.mrf.mxu1  ;;  %p1968_p4 = por %p1967_p3, %p1966_p2 }
 0x2f6   :  { %v1153_v56 = vadd.f32 %v1778_v63, %v1758_v36 }
 0x2f7   :  { %v1144_v49 = vpop.f32.mrf.mxu1  ;;  %p1969_p5 = pnand %p1968_p4, %p1962_p1 }
 0x2f8   :  { %v1145_v54 = vadd.f32 %v1144_v49, %v1047_v46  ;;  %v1898_v49 = vld [vmem:[#allocation2] sm:$0xff] }
 0x30d   :  { %v1797_v47 = vpop.f32.mrf.mxu0 }
 0x30e   :  { %v1273_v57 = vadd.f32 %v1797_v47, %v1150_v15 }
 0x30f   :  { %v1256_v13 = vpop.f32.mrf.mxu0 }
 0x310   :  { %v1271_v55 = vadd.f32 %v1256_v13, %v1142_v51  ;;  %v1287_v61 = vmul.f32 %v1273_v57, %v1273_v57  ;;  %v1899_v51 = vld [vmem:[#allocation2 + $0x8] sm:$0xff] }
 0x311   :  { %v1798_v53 = vpop.f32.mrf.mxu0 }
 0x312   :  { %v1285_v11 = vmul.f32 %v1271_v55, %v1271_v55  ;;  %v1274_v58 = vadd.f32 %v1798_v53, %v1153_v56 }
 0x313   :  { %v1259_v5 = vpop.f32.mrf.mxu0 }
 0x314   :  { %v1272_v52 = vadd.f32 %v1259_v5, %v1145_v54  ;;  %v1288_v0 = vmul.f32 %v1274_v58, %v1274_v58 }
 0x316   :  { %v1275_v59 = vadd.f32 %v1272_v52, %v1271_v55  ;;  %v1286_v60 = vmul.f32 %v1272_v52, %v1272_v52 }
 0x318   :  { %v1276_v62 = vadd.f32 %v1275_v59, %v1273_v57  ;;  %v1289_v4 = vadd.f32 %v1286_v60, %v1285_v11 }
 0x31a   :  { %v1277_v14 = vadd.f32 %v1276_v62, %v1274_v58  ;;  %v1290_v12 = vadd.f32 %v1289_v4, %v1287_v61 }
 0x31c   :  { %v1278_v1 = vrot.slane %v1277_v14, 4  ;;  %v1291_v18 = vadd.f32 %v1290_v12, %v1288_v0 }
 0x31e   :  { %v1279_v2 = vadd.f32 %v1278_v1, %v1277_v14  ;;  %v1292_v3 = vrot.slane %v1291_v18, 4 }
 0x320   :  { %v1280_v8 = vrot.slane %v1279_v2, 2  ;;  %v1293_v10 = vadd.f32 %v1292_v3, %v1291_v18 }
 0x322   :  { %v1281_v17 = vadd.f32 %v1280_v8, %v1279_v2  ;;  %v1294_v20 = vrot.slane %v1293_v10, 2 }
 0x324   :  { %v1282_v21 = vrot.slane %v1281_v17, 1  ;;  %v1295_v23 = vadd.f32 %v1294_v20, %v1293_v10 }
 0x326   :  { %v1283_v24 = vadd.f32 %v1282_v21, %v1281_v17  ;;  %v1296_v27 = vrot.slane %v1295_v23, 1 }
 0x328   :  { %v1297_v29 = vadd.f32 %v1296_v27, %v1295_v23  ;;  %v1284_v30 = vmul.f32 0.03125, %v1283_v24 }
 0x32a   :  { %v1298_v34 = vmul.f32 0.03125, %v1297_v29 }
 0x32c   :  { %v1299_v35 = vsel %vm2546_vm4, %v1284_v30, %v1298_v34 }
 0x32d   :  { %1832 = vmatmul.mubr.f32.vlgmr.msra.gmra.mxu1 %v1299_v35 }
 0x3ed   :  { %v1366_v37 = vpop.f32.mrf.mxu1 }
 0x3ee   :  { %v1370_v39 = vmul.f32 %v1366_v37, %v1366_v37  ;;  %v1380_v26 = vrot.slane %v1366_v37, %v865_v38 }
 0x3ef   :  { %v1833_v41 = vpop.f32.mrf.mxu1 }
 0x3f0   :  { %v1372_v45 = vrot.slane %v1370_v39, 7  ;;  %v1381_v7 = vsub.f32 %v1271_v55, %v1380_v26  ;;  %v1382_v6 = vsub.f32 %v1272_v52, %v1380_v26  ;;  %v1383_v16 = vsub.f32 %v1273_v57, %v1380_v26 }
 0x3f1   :  { %v1384_v19 = vsub.f32 %v1274_v58, %v1380_v26 }
 0x3f2   :  { %v1374_v48 = vsub.f32 %v1366_v37, %v1372_v45 }
 0x3f4   :  { %v1375_v50 = vadd.f32 1e-05, %v1374_v48 }
 0x3f6   :  { %1896 = vrsqrt.f32 %v1375_v50 }
 0x403   :  { %v1897_v40 = vpop.eup %1896 }
 0x404   :  { %v1392_v42 = vmul.f32 %v1897_v40, %v1548_v31 }
 0x406   :  { %v1396_v22 = vrot.slane %v1392_v42, %v881_v44  ;;  %v1900_v44 = vld [vmem:[#allocation2 + $0x18] sm:$0xff] }
 0x408   :  { %v1397_v28 = vmul.f32 %v1396_v22, %v1381_v7  ;;  %v1398_v32 = vmul.f32 %v1396_v22, %v1382_v6  ;;  %v1399_v38 = vmul.f32 %v1396_v22, %v1383_v16  ;;  %v1400_v36 = vmul.f32 %v1396_v22, %v1384_v19 }
 0x40a   :  { %v1408_v43 = vadd.f32 %v1549_v25, %v1397_v28  ;;  %v1409_v46 = vadd.f32 %v1549_v25, %v1398_v32  ;;  %v1410_v63 = vadd.f32 %v1549_v25, %v1399_v38  ;;  %v1411_v47 = vadd.f32 %v1549_v25, %v1400_v36 }
 0x40c   :  { %v1412_v13 = vadd.f32 %v1898_v49, %v1408_v43  ;;  %v1413_v53 = vadd.f32 %v1899_v51, %v1409_v46  ;;  %v1414_v9 = vadd.f32 %v1410_v63, %v2086_v33  ;;  %v1415_v15 = vadd.f32 %v1900_v44, %v1411_v47 }
 0x40e   :  { %v1416_v54 = vmax.f32 %v1412_v13, 0.0  ;;  %v1417_v55 = vmax.f32 %v1413_v53, 0.0  ;;  %v1418_v5 = vmax.f32 %v1414_v9, 0.0  ;;  %v1419_v56 = vmax.f32 %v1415_v15, 0.0 }
 0x410   :  { %1420 = vst [vmem:[#allocation8] sm:$0xff] %v1416_v54  ;;  %1421 = vst [vmem:[#allocation8 + $0x8] sm:$0xff] %v1417_v55 }
 0x411   :  { %1422 = vst [vmem:[#allocation8 + $0x10] sm:$0xff] %v1418_v5  ;;  %1423 = vst [vmem:[#allocation8 + $0x18] sm:$0xff] %v1419_v56 }
 0x412   :  { %1972 = shalt.err (!%p1969_p5)
}
 0x413   :  { %1435 = dma.vmem_to_hbm [thread:$0]  %s1430_s23, 512, %s2470_s7, [#allocation4], %s1991_s11, %s1991_s11, %s1992_s12  }
 0x414   :  { %1985 = dma.done.wait [#allocation4], 512  }
 0x415   :  { %1986 = vsyncadd [#allocation4], 4294966784 }
 0x416   :  { %1439 = vsyncpa [#allocation3], 1 }
 0x417   :  { %1440 = vsyncpa [#allocation6], 1 }
 0x418   :  { %1441 = vsyncpa [#allocation4], 1 }

</bundles_post_ra>
